<compile_context>
chip_gen: v6e
topology: v6e:2x2x1
jax: 0.10.0
libtpu: 0.0.40
codegen_flags: <defaults>
</compile_context>

<pallas_src>
import functools

import jax
import jax.numpy as jnp
from jax.experimental import pallas as pl
from jax.experimental.pallas import tpu as pltpu

LANE = 128


def _round_up(a, b):
    return ((a + b - 1) // b) * b


def _cdiv(a, b):
    return (a + b - 1) // b


def _dice_ce_kernel(pred_ref, tgt_ref, out_ref,
                    acc_pt, acc_p, acc_t, acc_ce,
                    *, hw, n_classes, tile, grid_j, has_tail,
                    log_dice, one_hot_target):
    j = pl.program_id(1)

    @pl.when(j == 0)
    def _():
        acc_pt[...] = jnp.zeros_like(acc_pt)
        acc_p[...] = jnp.zeros_like(acc_p)
        acc_t[...] = jnp.zeros_like(acc_t)
        acc_ce[...] = jnp.zeros_like(acc_ce)

    def step(masked):
        x = pred_ref[...].astype(jnp.float32)   # (C, T) logits
        t = tgt_ref[...].astype(jnp.float32)    # (C, T) targets
        if masked:
            # OOB lanes of the last tile hold garbage; sanitize so exp/log
            # can't produce inf/NaN and the padded tail contributes nothing.
            col = jax.lax.broadcasted_iota(jnp.int32, (1, tile), 1) + j * tile
            valid = col < hw                                    # (1, T) bool
            x = jnp.where(valid, x, 0.0)
            t = jnp.where(valid, t, 0.0)

        # Numerically stable softmax over the (small) channel axis.
        xmax = jnp.max(x, axis=0, keepdims=True)                # (1, T)
        e = jnp.exp(x - xmax)                                   # (C, T)
        s = jnp.sum(e, axis=0, keepdims=True)                   # (1, T)
        inv_s = pl.reciprocal(s, approx=True)                   # EUP slot
        if masked:
            # Fold the mask into the normalizer: p == 0 on padded lanes.
            inv_s = jnp.where(valid, inv_s, 0.0)
        p = e * inv_s                                           # (C, T)

        # Cross-entropy: logit at the target class.
        if one_hot_target:
            x_sel = jnp.sum(x * t, axis=0, keepdims=True)       # (1, T)
        else:
            # torch argmax tie-break = first maximal index.
            c_iota = jax.lax.broadcasted_iota(jnp.int32, (n_classes, tile), 0)
            tmax = jnp.max(t, axis=0, keepdims=True)
            idx = jnp.min(jnp.where(t == tmax, c_iota, n_classes),
                          axis=0, keepdims=True)
            onehot = (c_iota == idx).astype(jnp.float32)
            x_sel = jnp.sum(x * onehot, axis=0, keepdims=True)
        lse = xmax + jnp.log(s)                                 # (1, T)
        ce = lse - x_sel
        if masked:
            ce = jnp.where(valid, ce, 0.0)

        # Dice partial sums: pure VPU adds into full-width VMEM accumulators.
        acc_pt[...] += p * t
        acc_p[...] += p
        acc_t[...] += t
        acc_ce[...] += ce

    if has_tail:
        @pl.when(j == grid_j - 1)
        def _():
            step(True)

        @pl.when(j != grid_j - 1)
        def _():
            step(False)
    else:
        step(False)

    # Per-batch-element epilogue: one lane reduction of the accumulators and a
    # lane-dense per-n partial output.  No cross-n state -> batch axis can be
    # "parallel" (v7x splits the batch across its two TensorCores).
    @pl.when(j == grid_j - 1)
    def _():
        inter = jnp.sum(acc_pt[...], axis=1, keepdims=True)     # (C, 1)
        s_p = jnp.sum(acc_p[...], axis=1, keepdims=True)
        s_t = jnp.sum(acc_t[...], axis=1, keepdims=True)
        dice = 2.0 * inter / (s_p + s_t)
        if log_dice:
            dice = jnp.log(dice)
        dice_sum_n = jnp.sum(dice)                              # scalar
        ce_sum_n = jnp.sum(acc_ce[...])                         # scalar
        lane = jax.lax.broadcasted_iota(jnp.int32, (1, LANE), 1)
        out_ref[...] = (jnp.where(lane == 0, dice_sum_n, 0.0)
                        + jnp.where(lane == 1, ce_sum_n, 0.0))


def dice_ce_loss(prediction, target, *, dice_weight=1.0, ce_weight=1.0,
                 log_dice=False, one_hot_target=True):
    """Pallas implementation of DiceCE.forward(prediction, target)."""
    n, c, h, w = prediction.shape
    hw = h * w

    # Pixels-per-tile: lane-dense, ~512 KiB f32 per input block, chosen so it
    # divides the 128-rounded spatial extent -> at most one (masked) tail tile
    # and no wrapper-side padding pass over HBM.
    hw_rounded = _round_up(hw, LANE)
    t_cap = max(LANE, _round_up((128 * 1024) // max(c, 1), LANE))
    n_tiles = _cdiv(hw_rounded, t_cap)
    tile = _round_up(_cdiv(hw_rounded, n_tiles), LANE)
    grid_j = _cdiv(hw, tile)
    has_tail = (hw % tile) != 0

    pred = prediction.reshape(n, c, hw)
    tgt = target.reshape(n, c, hw)

    kernel = functools.partial(
        _dice_ce_kernel, hw=hw, n_classes=c, tile=tile, grid_j=grid_j,
        has_tail=has_tail, log_dice=bool(log_dice),
        one_hot_target=bool(one_hot_target))

    cost = pl.CostEstimate(
        flops=20 * n * c * hw,
        transcendentals=n * (c + 1) * hw,
        bytes_accessed=(pred.size * pred.dtype.itemsize
                        + tgt.size * tgt.dtype.itemsize
                        + n * LANE * 4))

    parts = pl.pallas_call(
        kernel,
        out_shape=jax.ShapeDtypeStruct((n, 1, LANE), jnp.float32),
        grid_spec=pltpu.PrefetchScalarGridSpec(
            num_scalar_prefetch=0,
            grid=(n, grid_j),
            in_specs=[
                pl.BlockSpec((None, c, tile), lambda i, j: (i, 0, j)),
                pl.BlockSpec((None, c, tile), lambda i, j: (i, 0, j)),
            ],
            out_specs=pl.BlockSpec((None, 1, LANE), lambda i, j: (i, 0, 0)),
            scratch_shapes=[
                pltpu.VMEM((c, tile), jnp.float32),   # sum(p*t) partials
                pltpu.VMEM((c, tile), jnp.float32),   # sum(p)   partials
                pltpu.VMEM((c, tile), jnp.float32),   # sum(t)   partials
                pltpu.VMEM((1, tile), jnp.float32),   # CE       partials
            ],
        ),
        compiler_params=pltpu.CompilerParams(
            dimension_semantics=("parallel", "arbitrary")),
        cost_estimate=cost,
    )(pred, tgt)

    # Tiny final combine (O(N) values) in the wrapper; keeps the kernel free of
    # cross-batch state so the batch grid axis can be megacore-parallel.
    dice_mean = jnp.sum(parts[:, 0, 0]) / float(n * c)
    ce_mean = jnp.sum(parts[:, 0, 1]) / float(n * hw)
    return dice_weight * (1.0 - dice_mean) + ce_weight * ce_mean


def _reference(prediction, target, *, dice_weight=1.0, ce_weight=1.0,
               log_dice=False):
    n, c, h, w = prediction.shape
    x = prediction.astype(jnp.float32)
    t = target.astype(jnp.float32)
    # DiceLoss
    p = jax.nn.softmax(x, axis=1)
    p2 = p.reshape(n, c, -1)
    t2 = t.reshape(n, c, -1)
    inter = jnp.sum(p2 * t2, axis=-1)
    union = jnp.sum(p2, axis=-1) + jnp.sum(t2, axis=-1)
    dice = 2.0 * inter / union
    if log_dice:
        dice = jnp.log(dice)
    dice_loss = 1.0 - jnp.mean(dice)
    # CrossEntropy4D
    logits_2d = jnp.transpose(x, (0, 2, 3, 1)).reshape(-1, c)
    labels = jnp.argmax(jnp.transpose(t, (0, 2, 3, 1)).reshape(-1, c), axis=1)
    lse = jax.scipy.special.logsumexp(logits_2d, axis=1)
    picked = jnp.take_along_axis(logits_2d, labels[:, None], axis=1)[:, 0]
    ce_loss = jnp.mean(lse - picked)
    return dice_weight * dice_loss + ce_weight * ce_loss


if __name__ == "__main__":
    key = jax.random.PRNGKey(0)
    k1, k2 = jax.random.split(key)
    N, C, H, W = 2, 4, 16, 16
    prediction = jax.random.normal(k1, (N, C, H, W), dtype=jnp.float32)
    labels = jax.random.randint(k2, (N, H, W), 0, C)
    target = jax.nn.one_hot(labels, C, axis=1, dtype=jnp.float32)  # (N, C, H, W)

    loss = dice_ce_loss(prediction, target, dice_weight=1.0, ce_weight=1.0)
    loss = jax.block_until_ready(loss)

    ref = _reference(prediction, target, dice_weight=1.0, ce_weight=1.0)
    # Tolerance loosened vs 1e-5 because the softmax denominator uses the EUP
    # approximate reciprocal (perf-review item); CE path is exact.
    assert jnp.allclose(loss, ref, rtol=2e-3, atol=2e-3), (loss, ref)
    print("KERNEL_OK")
</pallas_src>

<mosaic_0001>
module attributes {stable_mosaic.version = 11 : i64} {
  func.func @_dice_ce_kernel(%arg0: i32, %arg1: i32, %arg2: memref<1x4x256xf32, #tpu.memory_space<vmem>>, %arg3: memref<1x4x256xf32, #tpu.memory_space<vmem>>, %arg4: memref<1x1x128xf32, #tpu.memory_space<vmem>>, %arg5: memref<4x256xf32, #tpu.memory_space<vmem>>, %arg6: memref<4x256xf32, #tpu.memory_space<vmem>>, %arg7: memref<4x256xf32, #tpu.memory_space<vmem>>, %arg8: memref<1x256xf32, #tpu.memory_space<vmem>>) attributes {dimension_semantics = [#tpu.dimension_semantics<parallel>, #tpu.dimension_semantics<arbitrary>], iteration_bounds = array<i64: 2, 1>, scalar_prefetch = 0 : i64, scratch_operands = 4 : i64, tpu.core_type = #tpu.core_type<tc>, window_params = [{transform_indices = @transform_0, window_bounds = array<i64: 1, 4, 256>}, {transform_indices = @transform_1, window_bounds = array<i64: 1, 4, 256>}, {transform_indices = @transform_2, window_bounds = array<i64: 1, 1, 128>}]} {
    %c0_i32 = arith.constant 0 : i32
    %0 = arith.cmpi eq, %arg1, %c0_i32 : i32
    %1 = arith.extui %0 : i1 to i32
    %c0_i32_0 = arith.constant 0 : i32
    %2 = arith.cmpi ne, %1, %c0_i32_0 : i32
    scf.if %2 {
      %cst_26 = arith.constant 0.000000e+00 : f32
      %39 = vector.broadcast %cst_26 : f32 to vector<4x256xf32>
      %c0_27 = arith.constant 0 : index
      %c0_28 = arith.constant 0 : index
      %40 = vector.load %arg5[%c0_27, %c0_28] : memref<4x256xf32, #tpu.memory_space<vmem>>, vector<4x256xf32>
      tpu.vector_store %arg5[%c0_27, %c0_28], %39 {strides = array<i32>} : memref<4x256xf32, #tpu.memory_space<vmem>>, vector<4x256xf32>,
      %cst_29 = arith.constant 0.000000e+00 : f32
      %41 = vector.broadcast %cst_29 : f32 to vector<4x256xf32>
      %c0_30 = arith.constant 0 : index
      %c0_31 = arith.constant 0 : index
      %42 = vector.load %arg6[%c0_30, %c0_31] : memref<4x256xf32, #tpu.memory_space<vmem>>, vector<4x256xf32>
      tpu.vector_store %arg6[%c0_30, %c0_31], %41 {strides = array<i32>} : memref<4x256xf32, #tpu.memory_space<vmem>>, vector<4x256xf32>,
      %cst_32 = arith.constant 0.000000e+00 : f32
      %43 = vector.broadcast %cst_32 : f32 to vector<4x256xf32>
      %c0_33 = arith.constant 0 : index
      %c0_34 = arith.constant 0 : index
      %44 = vector.load %arg7[%c0_33, %c0_34] : memref<4x256xf32, #tpu.memory_space<vmem>>, vector<4x256xf32>
      tpu.vector_store %arg7[%c0_33, %c0_34], %43 {strides = array<i32>} : memref<4x256xf32, #tpu.memory_space<vmem>>, vector<4x256xf32>,
      %cst_35 = arith.constant 0.000000e+00 : f32
      %45 = vector.broadcast %cst_35 : f32 to vector<1x256xf32>
      %c0_36 = arith.constant 0 : index
      %c0_37 = arith.constant 0 : index
      %46 = vector.load %arg8[%c0_36, %c0_37] : memref<1x256xf32, #tpu.memory_space<vmem>>, vector<1x256xf32>
      tpu.vector_store %arg8[%c0_36, %c0_37], %45 {strides = array<i32>} : memref<1x256xf32, #tpu.memory_space<vmem>>, vector<1x256xf32>,
    } else {
    }
    %c0 = arith.constant 0 : index
    %c0_1 = arith.constant 0 : index
    %c0_2 = arith.constant 0 : index
    %3 = vector.load %arg2[%c0, %c0_1, %c0_2] : memref<1x4x256xf32, #tpu.memory_space<vmem>>, vector<1x4x256xf32>
    %4 = vector.shape_cast %3 : vector<1x4x256xf32> to vector<4x256xf32>
    %c0_3 = arith.constant 0 : index
    %c0_4 = arith.constant 0 : index
    %c0_5 = arith.constant 0 : index
    %5 = vector.load %arg3[%c0_3, %c0_4, %c0_5] : memref<1x4x256xf32, #tpu.memory_space<vmem>>, vector<1x4x256xf32>
    %6 = vector.shape_cast %5 : vector<1x4x256xf32> to vector<4x256xf32>
    %cst = arith.constant dense<0xFF800000> : vector<256xf32>
    %7 = vector.multi_reduction <maximumf>, %4, %cst [0] : vector<4x256xf32> to vector<256xf32>
    %8 = vector.shape_cast %7 : vector<256xf32> to vector<1x256xf32>
    %9 = vector.broadcast %8 : vector<1x256xf32> to vector<4x256xf32>
    %10 = arith.subf %4, %9 : vector<4x256xf32>
    %11 = math.exp %10 : vector<4x256xf32>
    %cst_6 = arith.constant dense<0.000000e+00> : vector<256xf32>
    %12 = vector.multi_reduction <add>, %11, %cst_6 [0] : vector<4x256xf32> to vector<256xf32>
    %13 = vector.shape_cast %12 : vector<256xf32> to vector<1x256xf32>
    %14 = tpu.reciprocal %13 {approx = true} : vector<1x256xf32> -> vector<1x256xf32>
    %15 = vector.broadcast %14 : vector<1x256xf32> to vector<4x256xf32>
    %16 = arith.mulf %11, %15 : vector<4x256xf32>
    %17 = arith.mulf %4, %6 : vector<4x256xf32>
    %cst_7 = arith.constant dense<0.000000e+00> : vector<256xf32>
    %18 = vector.multi_reduction <add>, %17, %cst_7 [0] : vector<4x256xf32> to vector<256xf32>
    %19 = vector.shape_cast %18 : vector<256xf32> to vector<1x256xf32>
    %20 = math.log %13 : vector<1x256xf32>
    %21 = arith.addf %8, %20 : vector<1x256xf32>
    %22 = arith.subf %21, %19 : vector<1x256xf32>
    %c0_8 = arith.constant 0 : index
    %c0_9 = arith.constant 0 : index
    %23 = vector.load %arg5[%c0_8, %c0_9] : memref<4x256xf32, #tpu.memory_space<vmem>>, vector<4x256xf32>
    %24 = arith.mulf %16, %6 : vector<4x256xf32>
    %25 = arith.addf %23, %24 : vector<4x256xf32>
    %c0_10 = arith.constant 0 : index
    %c0_11 = arith.constant 0 : index
    %26 = vector.load %arg5[%c0_10, %c0_11] : memref<4x256xf32, #tpu.memory_space<vmem>>, vector<4x256xf32>
    tpu.vector_store %arg5[%c0_10, %c0_11], %25 {strides = array<i32>} : memref<4x256xf32, #tpu.memory_space<vmem>>, vector<4x256xf32>,
    %c0_12 = arith.constant 0 : index
    %c0_13 = arith.constant 0 : index
    %27 = vector.load %arg6[%c0_12, %c0_13] : memref<4x256xf32, #tpu.memory_space<vmem>>, vector<4x256xf32>
    %28 = arith.addf %27, %16 : vector<4x256xf32>
    %c0_14 = arith.constant 0 : index
    %c0_15 = arith.constant 0 : index
    %29 = vector.load %arg6[%c0_14, %c0_15] : memref<4x256xf32, #tpu.memory_space<vmem>>, vector<4x256xf32>
    tpu.vector_store %arg6[%c0_14, %c0_15], %28 {strides = array<i32>} : memref<4x256xf32, #tpu.memory_space<vmem>>, vector<4x256xf32>,
    %c0_16 = arith.constant 0 : index
    %c0_17 = arith.constant 0 : index
    %30 = vector.load %arg7[%c0_16, %c0_17] : memref<4x256xf32, #tpu.memory_space<vmem>>, vector<4x256xf32>
    %31 = arith.addf %30, %6 : vector<4x256xf32>
    %c0_18 = arith.constant 0 : index
    %c0_19 = arith.constant 0 : index
    %32 = vector.load %arg7[%c0_18, %c0_19] : memref<4x256xf32, #tpu.memory_space<vmem>>, vector<4x256xf32>
    tpu.vector_store %arg7[%c0_18, %c0_19], %31 {strides = array<i32>} : memref<4x256xf32, #tpu.memory_space<vmem>>, vector<4x256xf32>,
    %c0_20 = arith.constant 0 : index
    %c0_21 = arith.constant 0 : index
    %33 = vector.load %arg8[%c0_20, %c0_21] : memref<1x256xf32, #tpu.memory_space<vmem>>, vector<1x256xf32>
    %34 = arith.addf %33, %22 : vector<1x256xf32>
    %c0_22 = arith.constant 0 : index
    %c0_23 = arith.constant 0 : index
    %35 = vector.load %arg8[%c0_22, %c0_23] : memref<1x256xf32, #tpu.memory_space<vmem>>, vector<1x256xf32>
    tpu.vector_store %arg8[%c0_22, %c0_23], %34 {strides = array<i32>} : memref<1x256xf32, #tpu.memory_space<vmem>>, vector<1x256xf32>,
    %c0_i32_24 = arith.constant 0 : i32
    %36 = arith.cmpi eq, %arg1, %c0_i32_24 : i32
    %37 = arith.extui %36 : i1 to i32
    %c0_i32_25 = arith.constant 0 : i32
    %38 = arith.cmpi ne, %37, %c0_i32_25 : i32
    scf.if %38 {
      %c0_26 = arith.constant 0 : index
      %c0_27 = arith.constant 0 : index
      %39 = vector.load %arg5[%c0_26, %c0_27] : memref<4x256xf32, #tpu.memory_space<vmem>>, vector<4x256xf32>
      %cst_28 = arith.constant dense<0.000000e+00> : vector<4xf32>
      %40 = vector.multi_reduction <add>, %39, %cst_28 [1] : vector<4x256xf32> to vector<4xf32>
      %41 = vector.shape_cast %40 : vector<4xf32> to vector<4x1xf32>
      %c0_29 = arith.constant 0 : index
      %c0_30 = arith.constant 0 : index
      %42 = vector.load %arg6[%c0_29, %c0_30] : memref<4x256xf32, #tpu.memory_space<vmem>>, vector<4x256xf32>
      %cst_31 = arith.constant dense<0.000000e+00> : vector<4xf32>
      %43 = vector.multi_reduction <add>, %42, %cst_31 [1] : vector<4x256xf32> to vector<4xf32>
      %44 = vector.shape_cast %43 : vector<4xf32> to vector<4x1xf32>
      %c0_32 = arith.constant 0 : index
      %c0_33 = arith.constant 0 : index
      %45 = vector.load %arg7[%c0_32, %c0_33] : memref<4x256xf32, #tpu.memory_space<vmem>>, vector<4x256xf32>
      %cst_34 = arith.constant dense<0.000000e+00> : vector<4xf32>
      %46 = vector.multi_reduction <add>, %45, %cst_34 [1] : vector<4x256xf32> to vector<4xf32>
      %47 = vector.shape_cast %46 : vector<4xf32> to vector<4x1xf32>
      %cst_35 = arith.constant 2.000000e+00 : f32
      %48 = vector.broadcast %cst_35 : f32 to vector<4x1xf32>
      %49 = arith.mulf %48, %41 : vector<4x1xf32>
      %50 = arith.addf %44, %47 : vector<4x1xf32>
      %51 = arith.divf %49, %50 : vector<4x1xf32>
      %52 = vector.shape_cast %51 : vector<4x1xf32> to vector<1x4x1xf32>
      %cst_36 = arith.constant dense<0.000000e+00> : vector<1xf32>
      %53 = vector.multi_reduction <add>, %52, %cst_36 [1, 2] : vector<1x4x1xf32> to vector<1xf32>
      %54 = vector.shape_cast %53 : vector<1xf32> to vector<1x1x1xf32>
      %55 = vector.extract %54[0, 0, 0] : f32 from vector<1x1x1xf32>
      %c0_37 = arith.constant 0 : index
      %c0_38 = arith.constant 0 : index
      %56 = vector.load %arg8[%c0_37, %c0_38] : memref<1x256xf32, #tpu.memory_space<vmem>>, vector<1x256xf32>
      %57 = vector.shape_cast %56 : vector<1x256xf32> to vector<1x1x256xf32>
      %cst_39 = arith.constant dense<0.000000e+00> : vector<1xf32>
      %58 = vector.multi_reduction <add>, %57, %cst_39 [1, 2] : vector<1x1x256xf32> to vector<1xf32>
      %59 = vector.shape_cast %58 : vector<1xf32> to vector<1x1x1xf32>
      %60 = vector.extract %59[0, 0, 0] : f32 from vector<1x1x1xf32>
      %61 = tpu.iota {dimensions = array<i32: 1>} : vector<1x128xi32>
      %c0_i32_40 = arith.constant 0 : i32
      %62 = vector.broadcast %c0_i32_40 : i32 to vector<1x128xi32>
      %63 = arith.cmpi eq, %61, %62 : vector<1x128xi32>
      %cst_41 = arith.constant 0.000000e+00 : f32
      %64 = vector.broadcast %55 : f32 to vector<1x128xf32>
      %65 = vector.broadcast %cst_41 : f32 to vector<1x128xf32>
      %66 = arith.select %63, %64, %65 : vector<1x128xi1>, vector<1x128xf32>
      %c1_i32 = arith.constant 1 : i32
      %67 = vector.broadcast %c1_i32 : i32 to vector<1x128xi32>
      %68 = arith.cmpi eq, %61, %67 : vector<1x128xi32>
      %cst_42 = arith.constant 0.000000e+00 : f32
      %69 = vector.broadcast %60 : f32 to vector<1x128xf32>
      %70 = vector.broadcast %cst_42 : f32 to vector<1x128xf32>
      %71 = arith.select %68, %69, %70 : vector<1x128xi1>, vector<1x128xf32>
      %72 = arith.addf %66, %71 : vector<1x128xf32>
      %c0_43 = arith.constant 0 : index
      %c0_44 = arith.constant 0 : index
      %c0_45 = arith.constant 0 : index
      %73 = vector.load %arg4[%c0_43, %c0_44, %c0_45] : memref<1x1x128xf32, #tpu.memory_space<vmem>>, vector<1x1x128xf32>
      %74 = vector.shape_cast %73 : vector<1x1x128xf32> to vector<1x128xf32>
      %75 = vector.shape_cast %72 : vector<1x128xf32> to vector<1x1x128xf32>
      tpu.vector_store %arg4[%c0_43, %c0_44, %c0_45], %75 {strides = array<i32>} : memref<1x1x128xf32, #tpu.memory_space<vmem>>, vector<1x1x128xf32>,
    } else {
    }
    return
  }
  func.func @transform_0(%arg0: i32, %arg1: i32) -> (i32, i32, i32) {
    %c0_i32 = arith.constant 0 : i32
    %c0_i32_0 = arith.constant 0 : i32
    return %arg0, %c0_i32, %arg1 : i32, i32, i32
  }
  func.func @transform_1(%arg0: i32, %arg1: i32) -> (i32, i32, i32) {
    %c0_i32 = arith.constant 0 : i32
    %c0_i32_0 = arith.constant 0 : i32
    return %arg0, %c0_i32, %arg1 : i32, i32, i32
  }
  func.func @transform_2(%arg0: i32, %arg1: i32) -> (i32, i32, i32) {
    %c0_i32 = arith.constant 0 : i32
    %c0_i32_0 = arith.constant 0 : i32
    %c0_i32_1 = arith.constant 0 : i32
    return %arg0, %c0_i32, %c0_i32_0 : i32, i32, i32
  }
}

</mosaic_0001>

<bundles_post_ra>
// kernel: tpu_custom_call.1
= control target key start
LH: loop header
LB: loop body
LE: loop exit
PB: predicated region body
PF: predicated region fallthrough
CT: control target
= control target key end

     0   :  { %7 = vsyncpa [#allocation7], 0  ;;  %s998_s0 = inlined_call_operand.hbm [shape: f32[2,4,256], index: 0, kind: input, shape index: {}]   ;;  %s999_s1 = inlined_call_operand.hbm [shape: f32[2,4,256], index: 1, kind: input, shape index: {}]   ;;  %s1000_s2 = inlined_call_operand.hbm [shape: f32[2,1,128], index: 2, kind: output, shape index: {}]  }
   0x1   :  { %9 = vsyncpa [#allocation7 + $0x1], 0 }
   0x2   :  { %10 = vsyncpa [#allocation10], 0 }
   0x3   :  { %12 = vsyncpa [#allocation10 + $0x1], 0 }
   0x4   :  { %13 = vsyncpa [#allocation8], 0 }
   0x5   :  { %15 = vsyncpa [#allocation8 + $0x1], 0  ;;  %s806_s9 = smov 0   ;;  %s808_s10 = smov 0  }
   0x6   :  { %s810_s11 = smov 0   ;;  %s812_s12 = smov 0  }
   0x7   :  { %s814_s13 = smov 0   ;;  %s816_s14 = smov 0  }
   0x8 LB: > { %s539_s15 = sadd.s32 4294967295, %s784_s14   ;;  %s540_s16 = sadd.s32 4294967294, %s784_s14   ;;  %s784_s14 = sphi %s816_s14, %s21_s14   ;;  %s780_s13 = sphi %s814_s13, %s1014_s13   ;;  %s776_s12 = sphi %s812_s12, %s1013_s12   ;;  %s772_s11 = sphi %s810_s11, %s1012_s11   ;;  %s768_s10 = sphi %s808_s10, %s1011_s10   ;;  %s764_s9 = sphi %s806_s9, %s1010_s9  }
   0x9   : > { %s33_s17 = sadd.s32 1, %s780_s13  ;;  %s42_s18 = sadd.s32 1, %s772_s11 }
   0xa   : > { %p35_p0 = scmp.ge.s32.totalorder %s33_s17, 2  ;;  %p49_p1 = scmp.ne.s32.totalorder %s772_s11, %s768_s10 }
   0xb   : > { %p50_p2 = scmp.eq.s32.totalorder %s784_s14, 0  ;;  %p55_p3 = scmp.ne.s32.totalorder %s768_s10, %s764_s9 }
   0xc   : > { %s1016_s17 = smov (%p35_p0, %s33_s17), 0  ;;  %p56_p5 = scmp.eq.s32.totalorder %s539_s15, 0 }
   0xd   : > { %p847_p4 = por %p50_p2, %p49_p1  ;;  %s37_s20 = ssub.s32 %s780_s13, %s1016_s17 }
   0xe   : > { %p107_p6 = scmp.eq.s32.totalorder %s539_s15, 1  ;;  %p40_p7 = scmp.eq.s32.totalorder %s37_s20, 0 }
   0xf   : > { %p853_p8 = por %p56_p5, %p55_p3  ;;  %p113_p10 = scmp.eq.s32.totalorder %s540_s16, 1 }
  0x10   : > { %p857_p9 = por %p107_p6, %p49_p1  ;;  %p578_p13 = scmp.lt.s32.totalorder %s784_s14, 2 }
  0x11   : > { %s862_s23 = scalar_select %p40_p7, %s772_s11, %s42_s18  }
  0x12   : > { %p864_p11 = por %p113_p10, %p55_p3  ;;  %s871_s25 = sand.u32 1, %s772_s11  }
  0x13   : > { %s543_s26 = sshll.u32 %s871_s25, 3  ;;  %s555_s27 = sshll.u32 %s780_s13, 7 }
  0x14   : > { %s145_s30 = scalar_lea.hbm %s998_s0, %s555_s27  ;;  %s137_s3 = scalar_lea.vmem [#allocation6], %s543_s26 }
  0x15   : > { %s147_s4 = sshll.u32 %s137_s3, 4  ;;  %p880_p0 = pnand %p578_p13, %p847_p4  ;;  %s148_s4 = int_to_ptr.vmem [resolvable:$true] %s147_s4 }
  0x16   : > { %p549_p1 = scmp.ge.s32.totalorder %s784_s14, 1  ;;  %p173_p2 = scmp.lt.s32.totalorder %s784_s14, 3 }
  0x17   : > { %s134_s6 = scalar_lea.sflag [#allocation7], %s871_s25  ;;  %p646_p3 = pneg %p880_p0 }
  0x18   : > { %s657_s7 = scalar_lea.vmem %s148_s4, 128  ;;  %s786_s8 = smov [#allocation6]  }
  0x19   : > { %p658_p5 = scmp.ne.s32.totalorder %s148_s4, %s657_s7  ;;  %s662_s15 = sshll.u32 %s786_s8, 4  ;;  %s663_s15 = int_to_ptr.vmem [resolvable:$false] %s662_s15 }
  0x1a   : > { %s664_s16 = scalar_lea.vmem %s663_s15, 256  ;;  %p665_p4 = scmp.lt.s32.totalorder %s148_s4, %s663_s15 }
  0x1b   : > { %p660_p6 = pnand %p658_p5, %p646_p3  ;;  %p666_p10 = scmp.lt.s32.totalorder %s664_s16, %s657_s7 }
  0x1d   : > { %p661_p7 = pneg %p660_p6  ;;  %p667_p13 = por %p666_p10, %p665_p4 }
  0x1f   : > { %p668_p12 = pnand %p667_p13, %p661_p7 }
  0x21   : > { %671 = shalt.err (!%p668_p12)
}
  0x22   : > { %570 = dma.hbm_to_vmem [thread:$0]  (!%p880_p0), %s145_s30, 128, %s148_s4, %s134_s6  }
  0x23   : > { %p898_p5 = pnand %p549_p1, %p173_p2  ;;  %s166_s28 = scalar_lea.hbm %s999_s1, %s555_s27 }
  0x24   : > { %s158_s29 = scalar_lea.vmem [#allocation9], %s543_s26  ;;  %s155_s7 = scalar_lea.sflag [#allocation10], %s871_s25 }
  0x25   : > { %s168_s3 = sshll.u32 %s158_s29, 4  ;;  %s787_s30 = smov [#allocation9]   ;;  %s169_s3 = int_to_ptr.vmem [resolvable:$true] %s168_s3 }
  0x26   : > { %s685_s8 = scalar_lea.vmem %s169_s3, 128  ;;  %s690_s4 = sshll.u32 %s787_s30, 4  ;;  %s691_s4 = int_to_ptr.vmem [resolvable:$false] %s690_s4 }
  0x27   : > { %p686_p12 = scmp.ne.s32.totalorder %s169_s3, %s685_s8  ;;  %s692_s6 = scalar_lea.vmem %s691_s4, 256 }
  0x28   : > { %p693_p1 = scmp.lt.s32.totalorder %s169_s3, %s691_s4  ;;  %p694_p2 = scmp.lt.s32.totalorder %s692_s6, %s685_s8 }
  0x29   : > { %p688_p6 = pnand %p686_p12, %p646_p3 }
  0x2a   : > { %p695_p4 = por %p694_p2, %p693_p1 }
  0x2b   : > { %p689_p7 = pneg %p688_p6 }
  0x2d   : > { %p696_p10 = pnand %p695_p4, %p689_p7 }
  0x2f   : > { %699 = shalt.err (!%p696_p10)
}
  0x30   : > { %573 = dma.hbm_to_vmem [thread:$0]  (!%p880_p0), %s166_s28, 128, %s169_s3, %s155_s7  }
  0x31   : > { %177 = sbr.rel (%p898_p5) target bundleno = 510 (0x1fe), region = 28  ;;  %s914_s25 = sand.u32 (!%p898_p5), 1, %s768_s10  }
  0x32   : > { %s550_s26 = sshll.u32 (!%p898_p5), %s914_s25, 3  ;;  %s180_s27 = scalar_lea.sflag (!%p898_p5), [#allocation7], %s914_s25 }
  0x33   : > { %s183_s15 = scalar_lea.vmem (!%p898_p5), [#allocation6], %s550_s26 }
  0x36   : > { %751 = dma.done.wait (%p853_p8), %s180_s27, 128  }
  0x37   : > { %753 = vsyncadd (%p853_p8), %s180_s27, 4294967168  ;;  %s189_s5 = scalar_lea.sflag [#allocation10], %s914_s25  ;;  %s923_s16 = scalar_lea.vmem [#allocation9], %s550_s26 }
  0x38   : > { %755 = dma.done.wait (%p853_p8), %s189_s5, 128  }
  0x39   : > { %757 = vsyncadd (%p853_p8), %s189_s5, 4294967168  ;;  %v226_v0 = vlaneseq  ;;  %v788_v2 = vmov 0.0   ;;  %vm236_vm1 = vcmask 1043456   ;;  %v231_v3 = vld [vmem:[%s183_s15] sm:$0xff]  ;;  %v232_v31 = vld [vmem:[%s923_s16] sm:$0xff]  ;;  %vm400_vm2 = vcmask 1040384  }
  0x3a   : > { %v234_v4 = vcombine.high %v231_v3, %v231_v3  ;;  %v237_v5 = vsel %vm236_vm1, %v231_v3, -inf  ;;  %v282_v34 = vmul.f32 %v232_v31, %v231_v3  ;;  %v366_v56 = vcombine.high %v232_v31, %v232_v31  ;;  %s552_s18 = sshll.u32 %s776_s12, 4  ;;  %s216_s20 = scalar_lea.vmem [#allocation11], %s914_s25 }
  0x3b   : > { %vm930_vm0 = vcmp.lt.s32.totalorder %v226_v0, 256  ;;  %v238_v6 = vrot.slane %v237_v5, 4  ;;  %v368_v63 = vsel %vm236_vm1, %v232_v31, 0.0  ;;  %vm377_vm3 = vcmask 3072   ;;  %s436_s28 = sshll.u32 %s216_s20, 4  ;;  %s434_s7 = scalar_lea.hbm %s1000_s2, %s552_s18  ;;  %s437_s28 = int_to_ptr.vmem [resolvable:$true] %s436_s28 }
  0x3c   : > { %230 = vst.msk [vmem:[#allocation5] sm:$0x3] %vm930_vm0, %v788_v2  ;;  %v244_v7 = vsel %vm236_vm1, %v234_v4, -inf  ;;  %v284_v39 = vcombine.high %v282_v34, %v282_v34  ;;  %v286_v41 = vsel %vm236_vm1, %v282_v34, 0.0  ;;  %v369_v4 = vsel %vm236_vm1, %v366_v56, 0.0  ;;  %s424_s8 = scalar_lea.sflag [#allocation8], %s914_s25 }
  0x3d   : > { %v239_v8 = vmax.f32 %v237_v5, %v238_v6  ;;  %v245_v9 = vrot.slane %v244_v7, 4  ;;  %v287_v43 = vrot.slane %v286_v41, 4  ;;  %s700_s30 = scalar_lea.vmem %s437_s28, 16  ;;  %s790_s12 = smov [#allocation11]  }
  0x3e   : > { %v293_v42 = vsel %vm236_vm1, %v284_v39, 0.0  ;;  %p701_p8 = scmp.ne.s32.totalorder %s437_s28, %s700_s30  ;;  %s704_s4 = sshll.u32 %s790_s12, 4  ;;  %s705_s4 = int_to_ptr.vmem [resolvable:$false] %s704_s4 }
  0x3f   : > { %v240_v10 = vrot.slane %v239_v8, 2  ;;  %v246_v11 = vmax.f32 %v244_v7, %v245_v9  ;;  %v294_v44 = vrot.slane %v293_v42, 4  ;;  %v288_v45 = vadd.f32 %v287_v43, %v286_v41  ;;  %s706_s6 = scalar_lea.vmem %s705_s4, 32  ;;  %p707_p13 = scmp.lt.s32.totalorder %s437_s28, %s705_s4 }
  0x40   : > { %p702_p0 = pnand %p701_p8, %p857_p9  ;;  %p708_p5 = scmp.lt.s32.totalorder %s706_s6, %s700_s30 }
  0x41   : > { %v241_v12 = vmax.f32 %v239_v8, %v240_v10  ;;  %v247_v13 = vrot.slane %v246_v11, 2  ;;  %v295_v46 = vadd.f32 %v294_v44, %v293_v42  ;;  %v289_v47 = vrot.slane %v288_v45, 2 }
  0x42   : > { %p703_p3 = pneg %p702_p0  ;;  %p709_p12 = por %p708_p5, %p707_p13 }
  0x43   : > { %v242_v14 = vrot.slane %v241_v12, 1  ;;  %v248_v15 = vmax.f32 %v246_v11, %v247_v13  ;;  %v296_v49 = vrot.slane %v295_v46, 2  ;;  %v290_v51 = vadd.f32 %v289_v47, %v288_v45 }
  0x44   : > { %p710_p6 = pnand %p709_p12, %p703_p3 }
  0x45   : > { %v243_v16 = vmax.f32 %v241_v12, %v242_v14  ;;  %v249_v17 = vrot.slane %v248_v15, 1  ;;  %v297_v54 = vadd.f32 %v296_v49, %v295_v46  ;;  %v291_v57 = vrot.slane %v290_v51, 1 }
  0x46   : > { %v370_v12 = vadd.f32 %v369_v4, %v368_v63 }
  0x47   : > { %v938_v18 = vmax.f32 %v248_v15, %v249_v17  ;;  %v298_v62 = vrot.slane %v297_v54, 1  ;;  %v292_v8 = vadd.f32 %v291_v57, %v290_v51  ;;  %v414_v57 = vand.u32 127, %v226_v0 }
  0x49   : > { %v253_v19 = vcombine.low %v243_v16, %v938_v18  ;;  %v299_v11 = vadd.f32 %v298_v62, %v297_v54  ;;  %vm415_vm4 = vcmp.eq.s32.totalorder %v414_v57, 0  ;;  %vm418_vm5 = vcmp.eq.s32.totalorder %v414_v57, 1 }
  0x4b   : > { %v255_v20 = vsub.f32 %v231_v3, %v253_v19  ;;  %v789_v19 = vmov 1966171168  }
  0x4d   : > { %v256_v21 = vmul.f32 1.442695, %v255_v20  ;;  %v323_v20 = vunpack.c.l.s4 %v789_v19 }
  0x4f   : > { %632 = vpow2.f32 %v256_v21 }
  0x5c   : > { %v633_v22 = vpop.eup %632 }
  0x5d   : > { %v259_v23 = vcombine.high %v633_v22, %v633_v22  ;;  %v261_v24 = vsel %vm236_vm1, %v633_v22, 0.0 }
  0x5e   : > { %v262_v25 = vrot.slane %v261_v24, 4 }
  0x5f   : > { %v268_v26 = vsel %vm236_vm1, %v259_v23, 0.0  ;;  %v326_v23 = vshrl.u32 %v226_v0, 7 }
  0x60   : > { %v263_v27 = vadd.f32 %v262_v25, %v261_v24  ;;  %v269_v28 = vrot.slane %v268_v26, 4 }
  0x62   : > { %v264_v29 = vrot.slane %v263_v27, 2  ;;  %v270_v30 = vadd.f32 %v269_v28, %v268_v26 }
  0x64   : > { %v265_v32 = vadd.f32 %v264_v29, %v263_v27  ;;  %v271_v33 = vrot.slane %v270_v30, 2  ;;  %v318_v27 = vld [vmem:[#allocation5] sm:$0x3]  ;;  %v392_v29 = vsub.s32 0, %v326_v23 }
  0x66   : > { %v266_v35 = vrot.slane %v265_v32, 1  ;;  %v272_v36 = vadd.f32 %v271_v33, %v270_v30  ;;  %v396_v30 = vsub.s32 1, %v326_v23 }
  0x68   : > { %v267_v37 = vadd.f32 %v266_v35, %v265_v32  ;;  %v273_v38 = vrot.slane %v272_v36, 1 }
  0x6a   : > { %v274_v40 = vadd.f32 %v273_v38, %v272_v36  ;;  %634 = vrcp.f32 %v267_v37 }
  0x6c   : > { %636 = vrcp.f32 %v274_v40 }
  0x6d   : > { %638 = vlog2.f32 %v267_v37 }
  0x6e   : > { %640 = vlog2.f32 %v274_v40 }
  0x77   : > { %v635_v48 = vpop.eup %634 }
  0x79   : > { %v637_v50 = vpop.eup %636 }
  0x7a   : > { %v639_v52 = vpop.eup %638  ;;  %v279_v53 = vcombine.low %v635_v48, %v637_v50 }
  0x7b   : > { %v301_v58 = vmul.f32 0.6931472, %v639_v52  ;;  %v641_v2 = vpop.eup %640 }
  0x7c   : > { %v281_v55 = vmul.f32 %v633_v22, %v279_v53  ;;  %v303_v14 = vmul.f32 0.6931472, %v641_v2  ;;  %v324_v22 = vunpack.c.0.s8 %v323_v20 }
  0x7d   : > { %v304_v9 = vadd.f32 %v301_v58, %v243_v16 }
  0x7e   : > { %v357_v59 = vcombine.high %v281_v55, %v281_v55  ;;  %v359_v60 = vsel %vm236_vm1, %v281_v55, 0.0  ;;  %v309_v61 = vmul.f32 %v281_v55, %v232_v31  ;;  %v305_v17 = vadd.f32 %v303_v14, %v938_v18 }
  0x7f   : > { %v306_v15 = vsub.f32 %v304_v9, %v292_v8  ;;  %v327_v16 = vsub.s32 %v324_v22, %v326_v23 }
  0x80   : > { %v360_v3 = vsel %vm236_vm1, %v357_v59, 0.0  ;;  %v348_v5 = vcombine.high %v309_v61, %v309_v61  ;;  %v350_v6 = vsel %vm236_vm1, %v309_v61, 0.0  ;;  %v307_v21 = vsub.f32 %v305_v17, %v299_v11 }
  0x81   : > { %v361_v7 = vadd.f32 %v360_v3, %v359_v60 }
  0x82   : > { %v351_v10 = vsel %vm236_vm1, %v348_v5, 0.0  ;;  %v321_v24 = vcombine.low %v306_v15, %v307_v21 }
  0x83   : > { %362 = vadd.xlane.f32.xlu0 %v361_v7  ;;  %v352_v13 = vadd.f32 %v351_v10, %v350_v6 }
  0x84   : > { %v328_v25 = vrot.slane %v321_v24, %v327_v16 }
  0x85   : > { %353 = vadd.xlane.f32.xlu1 %v352_v13 }
  0x86   : > { %v335_v26 = vrot.slane %v328_v25, %v327_v16 }
  0x87   : > { %371 = vadd.xlane.f32.xlu0 %v370_v12 }
  0x88   : > { %v337_v28 = vadd.f32 %v335_v26, %v318_v27 }
  0x8a   : > { %342 = vst.msk [vmem:[#allocation5] sm:$0x3] %vm930_vm0, %v337_v28 }
  0x91   : > { %v388_v31 = vld [vmem:[#allocation5] sm:$0x3] }
  0x92   : > { %v393_v18 = vrot.slane %v388_v31, %v392_v29  ;;  %v397_v32 = vrot.slane %v388_v31, %v396_v30 }
  0x94   : > { %v401_v33 = vsel %vm400_vm2, %v393_v18, 0.0  ;;  %v402_v34 = vsel %vm400_vm2, %v397_v32, 0.0 }
  0x95   : > { %v403_v35 = vadd.f32 %v402_v34, %v401_v33 }
  0x97   : > { %404 = vadd.xlane.f32.xlu0 %v403_v35 }
 0x10c   : > { %v363_v36 = vpop.xlane.xlu0 %362 }
 0x10e   : > { %v354_v39 = vpop.xlane.xlu1 %353 }
 0x10f   : > { %v373_v40 = vmul.f32 2.0, %v354_v39 }
 0x110   : > { %v372_v37 = vpop.xlane.xlu0 %371 }
 0x111   : > { %v374_v38 = vadd.f32 %v372_v37, %v363_v36 }
 0x113   : > { %642 = vrcp.f32 %v374_v38 }
 0x120   : > { %v643_v41 = vpop.eup %642  ;;  %v405_v43 = vpop.xlane.xlu0 %404 }
 0x121   : > { %v376_v1 = vmul.f32 %v643_v41, %v373_v40  ;;  %v406_v44 = vrot.slane %v405_v43, 4 }
 0x123   : > { %v378_v42 = vsel %vm377_vm3, %v376_v1, 0.0  ;;  %v407_v45 = vadd.f32 %v406_v44, %v405_v43 }
 0x124   : > { %379 = vadd.xlane.f32.xlu1 %v378_v42 }
 0x125   : > { %v408_v46 = vrot.slane %v407_v45, 2 }
 0x127   : > { %v409_v50 = vadd.f32 %v408_v46, %v407_v45 }
 0x129   : > { %v410_v53 = vrot.slane %v409_v50, 1 }
 0x12b   : > { %v411_v56 = vadd.f32 %v410_v53, %v409_v50 }
 0x1ad   : > { %v380_v47 = vpop.xlane.xlu1 %379 }
 0x1ae   : > { %v381_v48 = vrot.slane %v380_v47, 4 }
 0x1b0   : > { %v382_v49 = vadd.f32 %v381_v48, %v380_v47 }
 0x1b2   : > { %v383_v51 = vrot.slane %v382_v49, 2 }
 0x1b4   : > { %v384_v52 = vadd.f32 %v383_v51, %v382_v49 }
 0x1b6   : > { %v385_v54 = vrot.slane %v384_v52, 1 }
 0x1b8   : > { %v386_v55 = vadd.f32 %v385_v54, %v384_v52 }
 0x1ba   : > { %557 = vpush %v386_v55 }
 0x1bb   : > { %559 = vpush %v411_v56 }
 0x1eb   : > { %s558_s21 = spop %557 }
 0x1ec   : > { %v416_v58 = vstv %s558_s21  ;;  %s560_s19 = spop %559 }
 0x1ed   : > { %v417_v59 = vsel %vm415_vm4, %v416_v58, 0.0  ;;  %v419_v60 = vstv %s560_s19 }
 0x1ee   : > { %v420_v61 = vsel %vm418_vm5, %v419_v60, 0.0 }
 0x1ef   : > { %v421_v62 = vadd.f32 %v420_v61, %v417_v59 }
 0x1f1   : > { %422 = vst [vmem:[%s216_s20] sm:$0x1] %v421_v62 }
 0x1f2   : > { %713 = shalt.err (!%p710_p6)
}
 0x1f3   : > { %s714_s26 = scalar_lea.hbm %s434_s7, 16  ;;  %s718_s15 = scalar_lea.hbm %s1000_s2, 32 }
 0x1f4   : > { %p715_p7 = scmp.ne.s32.totalorder %s434_s7, %s714_s26  ;;  %p719_p4 = scmp.lt.s32.totalorder %s434_s7, %s1000_s2 }
 0x1f5   : > { %p720_p10 = scmp.lt.s32.totalorder %s718_s15, %s714_s26 }
 0x1f6   : > { %p716_p1 = pnand %p715_p7, %p857_p9 }
 0x1f7   : > { %p721_p8 = por %p720_p10, %p719_p4 }
 0x1f8   : > { %p717_p2 = pneg %p716_p1 }
 0x1fa   : > { %p722_p0 = pnand %p721_p8, %p717_p2 }
 0x1fc   : > { %725 = shalt.err (!%p722_p0)
}
 0x1fd   : > { %565 = dma.vmem_to_hbm [thread:$0]  (%p857_p9), %s437_s28, 16, %s434_s7, %s424_s8  }
 0x1fe PF: > { %s448_s21 = sand.u32 1, %s764_s9   ;;  %p1009_p3 = scmp.ge.s32.totalorder %s784_s14, 2 }
 0x1ff   : > { %s449_s18 = scalar_lea.sflag [#allocation8], %s448_s21 }
 0x200   : > { %p575_p13 = pnand %p1009_p3, %p864_p11 }
 0x202   : > { %p576_p5 = pneg %p575_p13 }
 0x204   : > { %759 = dma.done.wait (%p576_p5), %s449_s18, 16  }
 0x205   : > { %761 = vsyncadd (%p576_p5), %s449_s18, 4294967280  ;;  %s21_s14 = sadd.s32 1, %s784_s14   ;;  %s1010_s9 = smov %s768_s10 }
 0x206   : > { %p18_p12 = scmp.ge.s32.totalorder %s21_s14, 4   ;;  %s1011_s10 = smov %s772_s11 }
 0x207   : > { %s1012_s11 = smov %s862_s23  ;;  %s1013_s12 = smov %s780_s13 }
 0x208   : > { %s1014_s13 = smov %s1016_s17  ;;  %20 = sbr.rel (!%p18_p12) target bundleno = 8 (0x8), region = 94 }
 0x20d   :  { %453 = vsyncpa [#allocation7], 1 }
 0x20e   :  { %455 = vsyncpa [#allocation7 + $0x1], 1 }
 0x20f   :  { %456 = vsyncpa [#allocation10], 1 }
 0x210   :  { %458 = vsyncpa [#allocation10 + $0x1], 1 }
 0x211   :  { %459 = vsyncpa [#allocation8], 1 }
 0x212   :  { %461 = vsyncpa [#allocation8 + $0x1], 1 }

</bundles_post_ra>
